<compile_context>
chip_gen: v5e
topology: v5e:2x2
jax: 0.10.0
libtpu: 0.0.40
codegen_flags: <defaults>
</compile_context>

<pallas_src>
import functools

import jax
import jax.numpy as jnp
from jax.experimental import pallas as pl
from jax.experimental.pallas import tpu as pltpu


# ----------------------------------------------------------------------------
# Fused Pallas kernel: GIN (2 layers) + one-hot gather + MLP head
# ----------------------------------------------------------------------------
def _gist_fused_kernel(scal_ref,     # SMEM [4]            f32: eps0, eps1, mlp_b2, pad
                       amean_ref,    # VMEM [N, N]          deg_inv * A
                       sel_ref,      # VMEM [2B, N]         one-hot rows (col 0 zeroed)
                       wslab_ref,    # VMEM [N + 4H, H]     packed weights
                       bslab_ref,    # VMEM [8, H]          packed bias / w2 rows
                       out_ref,      # VMEM [B, 1]
                       *, n, b, h):
    eps0 = scal_ref[0]
    eps1 = scal_ref[1]
    mb2 = scal_ref[2]

    # Static slab views (zero-cost ref slices).
    xw1 = wslab_ref[0:n, :]                    # ndata @ gin_w1 (host-precomputed)
    gw2 = wslab_ref[n:n + h, :]
    mw0a = wslab_ref[n + h:n + 2 * h, :]
    mw0b = wslab_ref[n + 2 * h:n + 3 * h, :]
    mw1 = wslab_ref[n + 3 * h:n + 4 * h, :]    # [H, H], lanes H//2.. are zero

    gb1 = bslab_ref[0:1, :]
    gb2 = bslab_ref[1:2, :]
    mb0 = bslab_ref[2:3, :]
    mb1 = bslab_ref[3:4, :]                    # lane-padded to H with zeros
    w2row = bslab_ref[4:5, :]                  # mlp_w2^T, lane-padded to H

    a = amean_ref[...]

    # ---- GIN layer 0 : relu((1+eps0)*XW1 + A_mean @ XW1 + b1)
    h0 = (1.0 + eps0) * xw1 \
        + jnp.dot(a, xw1, preferred_element_type=jnp.float32) + gb1
    h0 = jnp.maximum(h0, 0.0)
    # dropout is eval-mode (identity).
    # TODO(synk): training-mode stochastic dropout would need pltpu.prng_* here.

    # ---- GIN layer 1 (last, no ReLU)
    h1 = (1.0 + eps1) * h0 + jnp.dot(a, h0, preferred_element_type=jnp.float32)
    x = jnp.dot(h1, gw2, preferred_element_type=jnp.float32) + gb2      # [N, H]

    # ---- gather ing1/ing2 rows via one-hot MXU matmul.
    # x[0] = 0 is folded into sel (column 0 zeroed), so no row-zero store and
    # no possibility of OOB VMEM reads from bad indices.
    y = jnp.dot(sel_ref[...], x, preferred_element_type=jnp.float32)    # [2B, H]
    y1 = y[0:b, :]
    y2 = y[b:2 * b, :]

    # ---- MLP head: cat(y1, y2) @ W0 == y1 @ W0[:H] + y2 @ W0[H:]
    t = (jnp.dot(y1, mw0a, preferred_element_type=jnp.float32)
         + jnp.dot(y2, mw0b, preferred_element_type=jnp.float32) + mb0)
    t = jnp.maximum(t, 0.0)
    t = jnp.dot(t, mw1, preferred_element_type=jnp.float32) + mb1
    t = jnp.maximum(t, 0.0)
    # final Linear(H//2, 1) as VPU multiply + lane reduce (padded lanes are 0)
    out = jnp.sum(t * w2row, axis=-1, keepdims=True) + mb2
    out_ref[...] = out.astype(out_ref.dtype)


@functools.partial(jax.jit, static_argnames=("nr",))
def gist_forward(kparams, indices, nr=0):
    """Fused GIST forward. `nr` unused for with_titles=with_set=False."""
    n = kparams["A_mean"].shape[0]
    hidden = kparams["bslab"].shape[1]
    bsz = indices.shape[0]

    # Per-call selection matrix: rows 0..B select ing1, rows B..2B select ing2.
    # Column 0 is zeroed to implement x[0] = 0 exactly for the gathered rows.
    ids = jnp.concatenate([indices[:, 0], indices[:, 1]]).astype(jnp.int32)      # [2B]
    cols = jnp.arange(n, dtype=jnp.int32)[None, :]
    sel = (ids[:, None] == cols).astype(jnp.float32)
    sel = sel * (cols != 0).astype(jnp.float32)

    vmem = pl.BlockSpec(memory_space=pltpu.MemorySpace.VMEM)
    smem = pl.BlockSpec(memory_space=pltpu.MemorySpace.SMEM)

    kernel = functools.partial(_gist_fused_kernel, n=n, b=bsz, h=hidden)
    return pl.pallas_call(
        kernel,
        out_shape=jax.ShapeDtypeStruct((bsz, 1), jnp.float32),
        in_specs=[smem, vmem, vmem, vmem, vmem],
        out_specs=vmem,
    )(kparams["scalars"], kparams["A_mean"], sel,
      kparams["wslab"], kparams["bslab"])


# ----------------------------------------------------------------------------
# Parameter construction (raw, PyTorch-like layout) + host-side precompute
# ----------------------------------------------------------------------------
def build_params(key, n_nodes, in_channels, hidden):
    ks = jax.random.split(key, 12)

    # dense weighted adjacency (A[dst, src] = edge weight), ~30% density
    mask = (jax.random.uniform(ks[0], (n_nodes, n_nodes)) < 0.3).astype(jnp.float32)
    w_edge = jax.random.uniform(ks[1], (n_nodes, n_nodes), minval=0.1, maxval=1.0)
    a = mask * w_edge
    # DGL 'mean' with edge weights: weighted sum / (unweighted) in-degree count
    deg = jnp.sum(mask, axis=1, keepdims=True)
    deg_inv = jnp.where(deg > 0, 1.0 / deg, 0.0)     # isolated node -> 0

    scale = 0.1
    return {
        "A": a,
        "deg_inv": deg_inv,
        # nn.Embedding(adj.num_nodes(), in_channels)
        "ndata": jax.random.normal(ks[2], (n_nodes, in_channels)) * scale,
        # GIN lin1 / lin2 (stored transposed: [in, out]) + learnable eps (init 0)
        "gin_w1": jax.random.normal(ks[3], (in_channels, hidden)) * scale,
        "gin_b1": jax.random.normal(ks[4], (1, hidden)) * scale,
        "gin_w2": jax.random.normal(ks[5], (hidden, hidden)) * scale,
        "gin_b2": jax.random.normal(ks[6], (1, hidden)) * scale,
        "gin_eps0": jnp.zeros((1,), jnp.float32),
        "gin_eps1": jnp.zeros((1,), jnp.float32),
        # MLP head: Linear(2H, H), Linear(H, H//2), Linear(H//2, 1)
        "mlp_w0": jax.random.normal(ks[7], (2 * hidden, hidden)) * scale,
        "mlp_b0": jax.random.normal(ks[8], (1, hidden)) * scale,
        "mlp_w1": jax.random.normal(ks[9], (hidden, hidden // 2)) * scale,
        "mlp_b1": jax.random.normal(ks[10], (1, hidden // 2)) * scale,
        "mlp_w2": jax.random.normal(ks[11], (hidden // 2, 1)) * scale,
        "mlp_b2": jnp.zeros((1, 1), jnp.float32),
    }


def prepare_kernel_params(p):
    """One-time host-side packing / algebraic precompute.

    eps stays a kernel input (learnable-eps semantics preserved).  All
    reassociations ((d*A)@x vs (A@x)*d, (x@W1) precompute) are exact only up
    to f32 rounding, not bit-exact.
    """
    hidden = p["gin_w1"].shape[1]
    half = hidden // 2

    a_mean = p["deg_inv"] * p["A"]                       # [N, N]
    xw1 = p["ndata"] @ p["gin_w1"]                       # [N, H]

    mw1_pad = jnp.zeros((hidden, hidden), jnp.float32).at[:, :half].set(p["mlp_w1"])
    wslab = jnp.concatenate(
        [xw1.astype(jnp.float32),
         p["gin_w2"], p["mlp_w0"][:hidden, :], p["mlp_w0"][hidden:, :], mw1_pad],
        axis=0)                                          # [N + 4H, H]

    def pad_row(r):
        return jnp.zeros((1, hidden), jnp.float32).at[:, :r.shape[1]].set(r)

    bslab = jnp.concatenate(
        [pad_row(p["gin_b1"]), pad_row(p["gin_b2"]), pad_row(p["mlp_b0"]),
         pad_row(p["mlp_b1"]), pad_row(p["mlp_w2"].T),
         jnp.zeros((3, hidden), jnp.float32)],
        axis=0)                                          # [8, H]

    scalars = jnp.array(
        [p["gin_eps0"][0], p["gin_eps1"][0], p["mlp_b2"][0, 0], 0.0], jnp.float32)

    return {"A_mean": a_mean, "wslab": wslab, "bslab": bslab, "scalars": scalars}


# ----------------------------------------------------------------------------
# Pure-JAX reference (mirrors the PyTorch forward) for a correctness check
# ----------------------------------------------------------------------------
def gist_reference(p, indices):
    x = p["ndata"]
    for w, b, eps, relu in ((p["gin_w1"], p["gin_b1"], p["gin_eps0"], True),
                            (p["gin_w2"], p["gin_b2"], p["gin_eps1"], False)):
        agg = (p["A"] @ x) * p["deg_inv"]
        h = (1.0 + eps[0]) * x + agg
        x = h @ w + b
        if relu:
            x = jnp.maximum(x, 0.0)
    x = x.at[0].set(0.0)
    y = jnp.concatenate([x[indices[:, 0]], x[indices[:, 1]]], axis=1)
    t = jnp.maximum(y @ p["mlp_w0"] + p["mlp_b0"], 0.0)
    t = jnp.maximum(t @ p["mlp_w1"] + p["mlp_b1"], 0.0)
    return t @ p["mlp_w2"] + p["mlp_b2"]


if __name__ == "__main__":
    N_NODES = 16
    IN_CHANNELS = 32
    HIDDEN = 32
    BATCH = 8

    key = jax.random.PRNGKey(0)
    k_params, k_idx = jax.random.split(key)

    raw_params = build_params(k_params, N_NODES, IN_CHANNELS, HIDDEN)
    kparams = prepare_kernel_params(raw_params)

    # indices[:, 0], indices[:, 1] are node ids; remaining columns unused for
    # the with_titles=False / with_set=False configuration.
    indices = jax.random.randint(k_idx, (BATCH, 4), 0, N_NODES, dtype=jnp.int32)

    out = gist_forward(kparams, indices, nr=0)
    out = jax.block_until_ready(out)
    assert out.shape == (BATCH, 1) and out.dtype == jnp.float32

    ref = gist_reference(raw_params, indices)
    assert jnp.allclose(out, ref, rtol=1e-4, atol=1e-4), (out, ref)

    print("KERNEL_OK")
</pallas_src>

<mosaic_0001>
module attributes {stable_mosaic.version = 11 : i64} {
  func.func @_gist_fused_kernel(%arg0: memref<4xf32, #tpu.memory_space<smem>>, %arg1: memref<16x16xf32, #tpu.memory_space<vmem>>, %arg2: memref<16x16xf32, #tpu.memory_space<vmem>>, %arg3: memref<144x32xf32, #tpu.memory_space<vmem>>, %arg4: memref<8x32xf32, #tpu.memory_space<vmem>>, %arg5: memref<8x1xf32, #tpu.memory_space<vmem>>) attributes {dimension_semantics = [], scalar_prefetch = 0 : i64, scratch_operands = 0 : i64, tpu.core_type = #tpu.core_type<tc>} {
    %c0 = arith.constant 0 : index
    %0 = memref.load %arg0[%c0] : memref<4xf32, #tpu.memory_space<smem>>
    %c1 = arith.constant 1 : index
    %1 = memref.load %arg0[%c1] : memref<4xf32, #tpu.memory_space<smem>>
    %c2 = arith.constant 2 : index
    %2 = memref.load %arg0[%c2] : memref<4xf32, #tpu.memory_space<smem>>
    %c0_0 = arith.constant 0 : index
    %c0_1 = arith.constant 0 : index
    %3 = vector.load %arg3[%c0_0, %c0_1] : memref<144x32xf32, #tpu.memory_space<vmem>>, vector<16x32xf32>
    %c16 = arith.constant 16 : index
    %c0_2 = arith.constant 0 : index
    %4 = vector.load %arg3[%c16, %c0_2] : memref<144x32xf32, #tpu.memory_space<vmem>>, vector<32x32xf32>
    %c48 = arith.constant 48 : index
    %c0_3 = arith.constant 0 : index
    %5 = vector.load %arg3[%c48, %c0_3] : memref<144x32xf32, #tpu.memory_space<vmem>>, vector<32x32xf32>
    %c80 = arith.constant 80 : index
    %c0_4 = arith.constant 0 : index
    %6 = vector.load %arg3[%c80, %c0_4] : memref<144x32xf32, #tpu.memory_space<vmem>>, vector<32x32xf32>
    %c112 = arith.constant 112 : index
    %c0_5 = arith.constant 0 : index
    %7 = vector.load %arg3[%c112, %c0_5] : memref<144x32xf32, #tpu.memory_space<vmem>>, vector<32x32xf32>
    %c0_6 = arith.constant 0 : index
    %c0_7 = arith.constant 0 : index
    %8 = vector.load %arg4[%c0_6, %c0_7] : memref<8x32xf32, #tpu.memory_space<vmem>>, vector<1x32xf32>
    %c1_8 = arith.constant 1 : index
    %c0_9 = arith.constant 0 : index
    %9 = vector.load %arg4[%c1_8, %c0_9] : memref<8x32xf32, #tpu.memory_space<vmem>>, vector<1x32xf32>
    %c2_10 = arith.constant 2 : index
    %c0_11 = arith.constant 0 : index
    %10 = vector.load %arg4[%c2_10, %c0_11] : memref<8x32xf32, #tpu.memory_space<vmem>>, vector<1x32xf32>
    %c3 = arith.constant 3 : index
    %c0_12 = arith.constant 0 : index
    %11 = vector.load %arg4[%c3, %c0_12] : memref<8x32xf32, #tpu.memory_space<vmem>>, vector<1x32xf32>
    %c4 = arith.constant 4 : index
    %c0_13 = arith.constant 0 : index
    %12 = vector.load %arg4[%c4, %c0_13] : memref<8x32xf32, #tpu.memory_space<vmem>>, vector<1x32xf32>
    %c0_14 = arith.constant 0 : index
    %c0_15 = arith.constant 0 : index
    %13 = vector.load %arg1[%c0_14, %c0_15] : memref<16x16xf32, #tpu.memory_space<vmem>>, vector<16x16xf32>
    %cst = arith.constant 1.000000e+00 : f32
    %14 = arith.addf %cst, %0 : f32
    %15 = vector.broadcast %14 : f32 to vector<16x32xf32>
    %16 = arith.mulf %15, %3 : vector<16x32xf32>
    %cst_16 = arith.constant dense<0.000000e+00> : vector<16x32xf32>
    %17 = tpu.matmul %13, %3, %cst_16 {dimension_numbers = #tpu.dot_dimension_numbers<[1], [0], [0], [1], [0, 0, 1, 1], [], []>} : vector<16x16xf32>, vector<16x32xf32>, vector<16x32xf32> -> vector<16x32xf32>
    %18 = arith.addf %16, %17 : vector<16x32xf32>
    %19 = vector.broadcast %8 : vector<1x32xf32> to vector<16x32xf32>
    %20 = arith.addf %18, %19 : vector<16x32xf32>
    %cst_17 = arith.constant 0.000000e+00 : f32
    %21 = vector.broadcast %cst_17 : f32 to vector<16x32xf32>
    %22 = arith.maximumf %20, %21 : vector<16x32xf32>
    %cst_18 = arith.constant 1.000000e+00 : f32
    %23 = arith.addf %cst_18, %1 : f32
    %24 = vector.broadcast %23 : f32 to vector<16x32xf32>
    %25 = arith.mulf %24, %22 : vector<16x32xf32>
    %cst_19 = arith.constant dense<0.000000e+00> : vector<16x32xf32>
    %26 = tpu.matmul %13, %22, %cst_19 {dimension_numbers = #tpu.dot_dimension_numbers<[1], [0], [0], [1], [0, 0, 1, 1], [], []>} : vector<16x16xf32>, vector<16x32xf32>, vector<16x32xf32> -> vector<16x32xf32>
    %27 = arith.addf %25, %26 : vector<16x32xf32>
    %cst_20 = arith.constant dense<0.000000e+00> : vector<16x32xf32>
    %28 = tpu.matmul %27, %4, %cst_20 {dimension_numbers = #tpu.dot_dimension_numbers<[1], [0], [0], [1], [0, 0, 1, 1], [], []>} : vector<16x32xf32>, vector<32x32xf32>, vector<16x32xf32> -> vector<16x32xf32>
    %29 = vector.broadcast %9 : vector<1x32xf32> to vector<16x32xf32>
    %30 = arith.addf %28, %29 : vector<16x32xf32>
    %c0_21 = arith.constant 0 : index
    %c0_22 = arith.constant 0 : index
    %31 = vector.load %arg2[%c0_21, %c0_22] : memref<16x16xf32, #tpu.memory_space<vmem>>, vector<16x16xf32>
    %cst_23 = arith.constant dense<0.000000e+00> : vector<16x32xf32>
    %32 = tpu.matmul %31, %30, %cst_23 {dimension_numbers = #tpu.dot_dimension_numbers<[1], [0], [0], [1], [0, 0, 1, 1], [], []>} : vector<16x16xf32>, vector<16x32xf32>, vector<16x32xf32> -> vector<16x32xf32>
    %33 = vector.extract_strided_slice %32 {offsets = [0, 0], sizes = [8, 32], strides = [1, 1]} : vector<16x32xf32> to vector<8x32xf32>
    %34 = vector.extract_strided_slice %32 {offsets = [8, 0], sizes = [8, 32], strides = [1, 1]} : vector<16x32xf32> to vector<8x32xf32>
    %cst_24 = arith.constant dense<0.000000e+00> : vector<8x32xf32>
    %35 = tpu.matmul %33, %5, %cst_24 {dimension_numbers = #tpu.dot_dimension_numbers<[1], [0], [0], [1], [0, 0, 1, 1], [], []>} : vector<8x32xf32>, vector<32x32xf32>, vector<8x32xf32> -> vector<8x32xf32>
    %cst_25 = arith.constant dense<0.000000e+00> : vector<8x32xf32>
    %36 = tpu.matmul %34, %6, %cst_25 {dimension_numbers = #tpu.dot_dimension_numbers<[1], [0], [0], [1], [0, 0, 1, 1], [], []>} : vector<8x32xf32>, vector<32x32xf32>, vector<8x32xf32> -> vector<8x32xf32>
    %37 = arith.addf %35, %36 : vector<8x32xf32>
    %38 = vector.broadcast %10 : vector<1x32xf32> to vector<8x32xf32>
    %39 = arith.addf %37, %38 : vector<8x32xf32>
    %cst_26 = arith.constant 0.000000e+00 : f32
    %40 = vector.broadcast %cst_26 : f32 to vector<8x32xf32>
    %41 = arith.maximumf %39, %40 : vector<8x32xf32>
    %cst_27 = arith.constant dense<0.000000e+00> : vector<8x32xf32>
    %42 = tpu.matmul %41, %7, %cst_27 {dimension_numbers = #tpu.dot_dimension_numbers<[1], [0], [0], [1], [0, 0, 1, 1], [], []>} : vector<8x32xf32>, vector<32x32xf32>, vector<8x32xf32> -> vector<8x32xf32>
    %43 = vector.broadcast %11 : vector<1x32xf32> to vector<8x32xf32>
    %44 = arith.addf %42, %43 : vector<8x32xf32>
    %cst_28 = arith.constant 0.000000e+00 : f32
    %45 = vector.broadcast %cst_28 : f32 to vector<8x32xf32>
    %46 = arith.maximumf %44, %45 : vector<8x32xf32>
    %47 = vector.broadcast %12 : vector<1x32xf32> to vector<8x32xf32>
    %48 = arith.mulf %46, %47 : vector<8x32xf32>
    %cst_29 = arith.constant dense<0.000000e+00> : vector<8xf32>
    %49 = vector.multi_reduction <add>, %48, %cst_29 [1] : vector<8x32xf32> to vector<8xf32>
    %50 = vector.shape_cast %49 : vector<8xf32> to vector<8x1xf32>
    %51 = vector.broadcast %2 : f32 to vector<8x1xf32>
    %52 = arith.addf %50, %51 : vector<8x1xf32>
    %c0_30 = arith.constant 0 : index
    %c0_31 = arith.constant 0 : index
    %53 = vector.load %arg5[%c0_30, %c0_31] : memref<8x1xf32, #tpu.memory_space<vmem>>, vector<8x1xf32>
    tpu.vector_store %arg5[%c0_30, %c0_31], %52 {strides = array<i32>} : memref<8x1xf32, #tpu.memory_space<vmem>>, vector<8x1xf32>,
    return
  }
}

</mosaic_0001>

<bundles_post_ra>
// kernel: gist_forward.1
= control target key start
LH: loop header
LB: loop body
LE: loop exit
PB: predicated region body
PF: predicated region fallthrough
CT: control target
= control target key end

     0   :  { %10 = vsyncpa [#allocation3], 0  ;;  %s314_s21 = smov [#allocation2]   ;;  %s444_s0 = inlined_call_operand.vmem [shape: f32[4], index: 0, kind: input, shape index: {}]   ;;  %s445_s1 = inlined_call_operand.vmem [shape: f32[16,16], index: 1, kind: input, shape index: {}]   ;;  %s446_s2 = inlined_call_operand.vmem [shape: f32[16,16], index: 2, kind: input, shape index: {}]   ;;  %s447_s3 = inlined_call_operand.vmem [shape: f32[144,32], index: 3, kind: input, shape index: {}]   ;;  %s448_s4 = inlined_call_operand.vmem [shape: f32[8,32], index: 4, kind: input, shape index: {}]   ;;  %s449_s5 = inlined_call_operand.vmem [shape: f32[8,1], index: 5, kind: output, shape index: {}]  }
   0x1   :  { %s16_s20 = sshll.u32 %s444_s0, 4  ;;  %s17_s20 = int_to_ptr.vmem [resolvable:$true] %s16_s20 }
   0x2   :  { %19 = dma.vmem_to_smem %s17_s20, 16, %s314_s21, [#allocation3]  }
   0x3   :  { %312 = dma.done.wait [#allocation3], 16  }
   0x4   :  { %313 = vsyncadd [#allocation3], 4294967280 }
   0x5   :  { %32 = sfence }
   0x6   :  { %v37_v0 = vld [vmem:[%s447_s3 + $0x8] sm:$0xff]  ;;  %v36_v1 = vld [vmem:[%s447_s3] sm:$0xff]  ;;  %vm65_vm0 = vcmask 130048   ;;  %s33_s29 = sld [smem:[#allocation2]]  ;;  %v39_v18 = vld [vmem:[%s447_s3 + $0x18] sm:$0xff]  ;;  %vm132_vm1 = vcmask 261120  }
   0x7   :  { %86 = vmatpush.msra.mxu0 %v37_v0  ;;  %v59_v2 = vld [vmem:[%s445_s1] sm:$0xff]  ;;  %v60_v3 = vld [vmem:[%s445_s1 + $0x8] sm:$0xff]  ;;  %v38_v19 = vld [vmem:[%s447_s3 + $0x10] sm:$0xff]  ;;  %s281_s15 = sld [smem:[#allocation2 + $0x1]]  ;;  %vm274_vm2 = vcmask 7168  }
   0x8   :  { %v41_v4 = vld [vmem:[%s447_s3 + $0x28] sm:$0xff]  ;;  %v40_v5 = vld [vmem:[%s447_s3 + $0x20] sm:$0xff]  ;;  %v43_v31 = vld [vmem:[%s447_s3 + $0x38] sm:$0xff]  ;;  %s282_s24 = sld [smem:[#allocation2 + $0x2]] }
   0x9   :  { %87 = vmatpush.msra.mxu0 %v36_v1  ;;  %151 = vmatpush.msra.mxu2 %v41_v4  ;;  %v295_v11 = vld [vmem:[%s448_s4] ss:$0 sm:$0xff]  ;;  %v49_v27 = vld [vmem:[%s447_s3 + $0x68] sm:$0xff]  ;;  %v296_v33 = vld [vmem:[%s448_s4 + $0x1] ss:$0 sm:$0xff] }
   0xa   :  { %283 = vmatmul.msk.f32.vlgmr.msra.gmra.mxu0 %vm65_vm0, %v59_v2  ;;  %v45_v28 = vld [vmem:[%s447_s3 + $0x48] sm:$0xff]  ;;  %v44_v29 = vld [vmem:[%s447_s3 + $0x40] sm:$0xff]  ;;  %v42_v39 = vld [vmem:[%s447_s3 + $0x30] sm:$0xff] }
   0xb   :  { %152 = vmatpush.msra.mxu2 %v40_v5  ;;  %208 = vmatpush.msrb.mxu0 %v49_v27  ;;  %v48_v30 = vld [vmem:[%s447_s3 + $0x60] sm:$0xff]  ;;  %v163_v38 = vld [vmem:[%s446_s2 + $0x8] sm:$0xff]  ;;  %v47_v40 = vld [vmem:[%s447_s3 + $0x58] sm:$0xff] }
   0xc   :  { %s61_s9 = sadd.f32 1.0, %s33_s29  ;;  %v162_v37 = vld [vmem:[%s446_s2] sm:$0xff]  ;;  %v46_v41 = vld [vmem:[%s447_s3 + $0x50] sm:$0xff]  ;;  %v53_v42 = vld [vmem:[%s447_s3 + $0x88] sm:$0xff] }
   0xd   :  { %153 = vmatpush.msra.mxu2 %v39_v18  ;;  %s102_s16 = sadd.f32 1.0, %s281_s15  ;;  %209 = vmatpush.msrb.mxu0 %v48_v30  ;;  %v52_v45 = vld [vmem:[%s447_s3 + $0x80] sm:$0xff]  ;;  %v51_v46 = vld [vmem:[%s447_s3 + $0x78] sm:$0xff]  ;;  %v50_v47 = vld [vmem:[%s447_s3 + $0x70] sm:$0xff] }
   0xe   :  { %v62_v6 = vstv %s61_s9  ;;  %v297_v48 = vld [vmem:[%s448_s4 + $0x2] ss:$0 sm:$0xff]  ;;  %v298_v54 = vld [vmem:[%s448_s4 + $0x3] ss:$0 sm:$0xff]  ;;  %v299_v57 = vld [vmem:[%s448_s4 + $0x4] ss:$0 sm:$0xff] }
   0xf   :  { %v63_v8 = vmul.f32 %v62_v6, %v36_v1  ;;  %v64_v9 = vmul.f32 %v62_v6, %v37_v0  ;;  %154 = vmatpush.msra.mxu2 %v38_v19  ;;  %v103_v20 = vstv %s102_s16  ;;  %210 = vmatpush.msrb.mxu0 %v47_v40  ;;  %v272_v61 = vstv %s282_s24 }
  0x11   :  { %211 = vmatpush.msrb.mxu0 %v46_v41 }
  0x12   :  { %284 = vmatmul.msk.f32.gmra.mxu0 %vm65_vm0, %v60_v3 }
  0x87   :  { %v89_v7 = vpop.f32.mrf.mxu0 }
  0x88   :  { %v95_v10 = vadd.f32 %v89_v7, %v63_v8 }
  0x8a   :  { %v98_v15 = vadd.f32 %v295_v11, %v95_v10 }
  0x8c   :  { %v100_v17 = vmax.f32 %v98_v15, 0.0 }
  0x8e   :  { %v104_v21 = vmul.f32 %v103_v20, %v100_v17 }
  0x8f   :  { %v92_v12 = vpop.f32.mrf.mxu0 }
  0x90   :  { %v96_v13 = vadd.f32 %v92_v12, %v64_v9 }
  0x92   :  { %v99_v14 = vadd.f32 %v295_v11, %v96_v13 }
  0x94   :  { %v101_v16 = vmax.f32 %v99_v14, 0.0 }
  0x96   :  { %120 = vmatpush.msra.mxu1 %v101_v16  ;;  %v105_v24 = vmul.f32 %v103_v20, %v101_v16 }
  0x98   :  { %121 = vmatpush.msra.mxu1 %v100_v17 }
  0x99   :  { %285 = vmatmul.msk.f32.vlgmr.msra.gmra.mxu1 %vm65_vm0, %v59_v2 }
  0x9a   :  { %231 = vmatpush.msrb.mxu1 %v45_v28 }
  0x9c   :  { %232 = vmatpush.msrb.mxu1 %v44_v29 }
  0x9e   :  { %233 = vmatpush.msrb.mxu1 %v43_v31 }
  0xa0   :  { %234 = vmatpush.msrb.mxu1 %v42_v39 }
  0xa1   :  { %286 = vmatmul.msk.f32.gmra.mxu1 %vm65_vm0, %v60_v3 }
 0x116   :  { %v123_v22 = vpop.f32.mrf.mxu1 }
 0x117   :  { %v129_v23 = vadd.f32 %v123_v22, %v104_v21 }
 0x119   :  { %287 = vmatmul.msk.f32.vlgmr.msra.gmra.mxu2 %vm132_vm1, %v129_v23 }
 0x11e   :  { %v126_v25 = vpop.f32.mrf.mxu1 }
 0x11f   :  { %v130_v26 = vadd.f32 %v126_v25, %v105_v24 }
 0x121   :  { %288 = vmatmul.msk.f32.gmra.mxu2 %vm132_vm1, %v130_v26 }
 0x19c   :  { %v156_v32 = vpop.f32.mrf.mxu2 }
 0x19d   :  { %v157_v36 = vadd.f32 %v296_v33, %v156_v32 }
 0x1a4   :  { %v159_v34 = vpop.f32.mrf.mxu2 }
 0x1a5   :  { %v160_v35 = vadd.f32 %v296_v33, %v159_v34 }
 0x1a7   :  { %184 = vmatpush.msra.mxu3 %v160_v35 }
 0x1a9   :  { %185 = vmatpush.msra.mxu3 %v157_v36 }
 0x1aa   :  { %289 = vmatmul.msk.f32.vlgmr.msra.gmra.mxu3 %vm65_vm0, %v162_v37 }
 0x1ab   :  { %258 = vmatpush.msrb.mxu3 %v53_v42 }
 0x1ad   :  { %259 = vmatpush.msrb.mxu3 %v52_v45 }
 0x1af   :  { %260 = vmatpush.msrb.mxu3 %v51_v46 }
 0x1b1   :  { %261 = vmatpush.msrb.mxu3 %v50_v47 }
 0x1b2   :  { %290 = vmatmul.msk.f32.gmra.mxu3 %vm65_vm0, %v163_v38 }
 0x22d   :  { %v187_v43 = vpop.f32.mrf.mxu3 }
 0x22e   :  { %292 = vmatmul.msk.f32.vlgmr.msrb.gmra.mxu1 %vm132_vm1, %v187_v43 }
 0x235   :  { %v190_v44 = vpop.f32.mrf.mxu3 }
 0x236   :  { %291 = vmatmul.msk.f32.vlgmr.msrb.gmra.mxu0 %vm132_vm1, %v190_v44 }
 0x2ab   :  { %v236_v49 = vpop.f32.mrf.mxu1 }
 0x2b3   :  { %v213_v50 = vpop.f32.mrf.mxu0 }
 0x2b4   :  { %v237_v51 = vadd.f32 %v236_v49, %v213_v50 }
 0x2b6   :  { %v240_v52 = vadd.f32 %v297_v48, %v237_v51 }
 0x2b8   :  { %v241_v53 = vmax.f32 %v240_v52, 0.0 }
 0x2ba   :  { %293 = vmatmul.msk.f32.vlgmr.msrb.gmra.mxu3 %vm132_vm1, %v241_v53 }
 0x33d   :  { %v263_v55 = vpop.f32.mrf.mxu3 }
 0x33e   :  { %v264_v56 = vadd.f32 %v298_v54, %v263_v55 }
 0x340   :  { %v266_v58 = vmax.f32 %v264_v56, 0.0 }
 0x342   :  { %v268_v59 = vmul.f32 %v299_v57, %v266_v58 }
 0x344   :  { %v269_v60 = vsel %vm132_vm1, %v268_v59, 0.0 }
 0x345   :  { %270 = vadd.xlane.f32.xlu0 %v269_v60 }
 0x3b8   :  { %v271_v62 = vpop.xlane.xlu0 %270 }
 0x3b9   :  { %v273_v63 = vadd.f32 %v272_v61, %v271_v62 }
 0x3bb   :  { %275 = vst.msk [vmem:[%s449_s5] sm:$0xff] %vm274_vm2, %v273_v63 }
 0x3bc   :  { %280 = vsyncpa [#allocation3], 1 }

</bundles_post_ra>
